<compile_context>
chip_gen: v6e
topology: v6e:2x2x1
jax: 0.10.0
libtpu: 0.0.40
codegen_flags: <defaults>
</compile_context>

<pallas_src>
import jax
import jax.numpy as jnp
import numpy as np
from jax.experimental import pallas as pl
from jax.experimental.pallas import tpu as pltpu

_X_PAD = 128          # lane width of the one-hot / b_feature input half
_ROW_BLOCK = 256      # row tile for large batches (multiple of 8)


def _round_up(x, m):
    return ((x + m - 1) // m) * m


def _bilstm_fused_kernel(stage_ref, state_ref, w_ref, bias_ref, hc_ref):
    """One bidirectional LSTM step, both directions in a single fused matmul.

    stage_ref: (Nb, 2)      f32  [token_id (as f32), b_feature]
    state_ref: (Nb, 4H)     f32  [h_fwd | h_bwd | c_fwd | c_bwd]
    w_ref:     (128+4H, 8H) bf16 fused weight (folded emb | W_hh blkdiag | 0)
    bias_ref:  (1, 8H)      f32  b_ih + b_hh in L2 gate layout
    hc_ref:    (Nb, 4H)     f32  [h_fwd | h_bwd | c_fwd | c_bwd] (aliases state)
    """
    n = stage_ref.shape[0]
    four_h = state_ref.shape[1]
    two_h = four_h // 2
    x_pad = w_ref.shape[0] - four_h

    stage = stage_ref[...]
    ids = stage[:, 0:1].astype(jnp.int32)                    # (Nb, 1)
    bf = stage[:, 1:2]                                       # (Nb, 1)

    # Embedding gather as a one-hot row (MXU friendly, no DMA gather); the
    # b_feature is spliced into the reserved last lane.
    lane = jax.lax.broadcasted_iota(jnp.int32, (n, x_pad), 1)
    onehot = (lane == ids).astype(jnp.float32)
    x_in = jnp.where(lane == x_pad - 1, bf, onehot)          # (Nb, 128)

    state = state_ref[...]                                   # (Nb, 4H)
    c0 = state[:, two_h:]                                    # (Nb, 2H)

    # LHS = [x_in | h | c]; concat splits at lane 128 (vreg boundary -> free).
    lhs = jnp.concatenate([x_in, state], axis=-1).astype(jnp.bfloat16)
    gates = (jnp.dot(lhs, w_ref[...], preferred_element_type=jnp.float32)
             + bias_ref[...])                                # (Nb, 8H)

    # L2 gate layout: [ i_f i_b | f_f f_b | g_f g_b | o_f o_b ], blocks of H.
    # One sigmoid + one tanh over the full 8H row, combined with a static
    # lane mask (avoids four half-vreg slice activations).
    glane = jax.lax.broadcasted_iota(jnp.int32, gates.shape, 1)
    is_g = (glane >= 2 * two_h) & (glane < 3 * two_h)
    act = jnp.where(is_g, jnp.tanh(gates), jax.nn.sigmoid(gates))

    i_g = act[:, 0 * two_h:1 * two_h]
    f_g = act[:, 1 * two_h:2 * two_h]
    g_g = act[:, 2 * two_h:3 * two_h]
    o_g = act[:, 3 * two_h:4 * two_h]

    c_new = f_g * c0 + i_g * g_g                             # (Nb, 2H)
    h_new = o_g * jnp.tanh(c_new)                            # (Nb, 2H)

    # Lane-dense packed output [h_f|h_b|c_f|c_b]: one unmasked store.
    hc_ref[...] = jnp.concatenate([h_new, c_new], axis=-1)


@jax.jit
def _encoder_core(kparams, ids2d, hidden, c, bf2d):
    w_fused, bias = kparams["w_fused"], kparams["bias"]
    h = bias.shape[1] // 8
    n = ids2d.shape[0]

    # One small staging array instead of two (N,1) inputs.
    stage = jnp.concatenate([ids2d.astype(jnp.float32),
                             bf2d.astype(jnp.float32)], axis=-1)       # (N, 2)
    # Packed state slab, same layout as the kernel output.
    state = jnp.concatenate([hidden[0], hidden[1], c[0], c[1]],
                            axis=-1).astype(jnp.float32)               # (N, 4H)

    # Row padding / blocking: one block for small N, 256-row blocks for large
    # N (shards across v7x's two TensorCores via "parallel" semantics).
    if n <= _ROW_BLOCK:
        n_pad = _round_up(n, 8)
        row_blk = n_pad
    else:
        row_blk = _ROW_BLOCK
        n_pad = _round_up(n, row_blk)
    if n_pad != n:
        stage = jnp.pad(stage, ((0, n_pad - n), (0, 0)))
        state = jnp.pad(state, ((0, n_pad - n), (0, 0)))

    hc = pl.pallas_call(
        _bilstm_fused_kernel,
        out_shape=jax.ShapeDtypeStruct((n_pad, 4 * h), jnp.float32),
        grid=(n_pad // row_blk,),
        in_specs=[
            pl.BlockSpec((row_blk, 2), lambda r: (r, 0)),
            pl.BlockSpec((row_blk, 4 * h), lambda r: (r, 0)),
            pl.BlockSpec(w_fused.shape, lambda r: (0, 0)),   # resident weight
            pl.BlockSpec(bias.shape, lambda r: (0, 0)),      # resident bias
        ],
        out_specs=pl.BlockSpec((row_blk, 4 * h), lambda r: (r, 0)),
        input_output_aliases={1: 0},      # state slab feeds straight into hc
        compiler_params=pltpu.CompilerParams(
            dimension_semantics=("parallel",)),
    )(stage, state, w_fused, bias)

    hc = hc[:n]
    h_new = hc[:, :2 * h]                                    # (N, 2H)=[fwd|bwd]
    c_new = hc[:, 2 * h:]

    # For seq_len == 1, LSTM output == final hidden (both directions at t=0).
    output = h_new[:, None, :]                               # (N, 1, 2H)
    hidden_out = jnp.stack([h_new[:, :h], h_new[:, h:]], axis=0)   # (2, N, H)
    c_out = jnp.stack([c_new[:, :h], c_new[:, h:]], axis=0)        # (2, N, H)
    return output, (hidden_out, c_out)


def encoder_rnn_document_forward(kparams, input_ids, hidden, c, b_feature,
                                 is_in_a=None):
    """JAX/Pallas equivalent of EncoderRNN_Document.forward (eval mode).

    `is_in_a` and `self.bn` are unused by the PyTorch forward; dropout is
    identity in eval mode.  ids must satisfy 0 <= id < vocab (< 127).
    """
    del is_in_a
    n = int(np.prod(np.asarray(input_ids).shape))
    h = kparams["bias"].shape[1] // 8
    if hidden is None:                     # PyTorch LSTM default zero state
        hidden = jnp.zeros((2, n, h), jnp.float32)
        c = jnp.zeros((2, n, h), jnp.float32)
    ids2d = jnp.asarray(input_ids).reshape(n, 1).astype(jnp.int32)
    bf2d = jnp.asarray(b_feature).reshape(n, 1).astype(jnp.float32)
    return _encoder_core(kparams, ids2d, hidden, c, bf2d)


def init_raw_params(key, vocab_size, emb_dim, hidden_size):
    """PyTorch-style raw params: frozen embedding + per-direction LSTM weights."""
    h = hidden_size
    d = emb_dim + 1
    k = 1.0 / jnp.sqrt(jnp.float32(h))
    ks = jax.random.split(key, 5)
    return {
        "embedding": jax.random.normal(ks[0], (vocab_size, emb_dim), jnp.float32),
        "w_ih": jax.random.uniform(ks[1], (2, 4 * h, d), jnp.float32, -k, k),
        "w_hh": jax.random.uniform(ks[2], (2, 4 * h, h), jnp.float32, -k, k),
        "b_ih": jax.random.uniform(ks[3], (2, 4 * h), jnp.float32, -k, k),
        "b_hh": jax.random.uniform(ks[4], (2, 4 * h), jnp.float32, -k, k),
    }


def prepare_params(raw):
    """One-time prep: L2 gate layout, embedding folding, single fused bf16 weight.

    Fused weight rows (K = 128 + 4H):
      [0 : V)              emb @ W_ih_emb   (frozen embedding folded in)
      row 127              W_ih's b_feature column
      [128 : 128+2H)       block-diagonal W_hh (rows = packed [h_f | h_b])
      [128+2H : 128+4H)    zeros (the c half of the packed state slab)
    """
    emb = raw["embedding"]                      # (V, E), frozen
    w_ih, w_hh = raw["w_ih"], raw["w_hh"]       # (2, 4H, D), (2, 4H, H)
    b = raw["b_ih"] + raw["b_hh"]               # (2, 4H)
    v, e = emb.shape
    four_h, d = w_ih.shape[1], w_ih.shape[2]
    h = four_h // 4
    assert d == e + 1
    # TODO(synk): large-vocab fallback (wrapper-side gather + (D,8H) rows); the
    # folded one-hot table only makes sense while vocab + 1 <= 128.
    assert v + 1 <= _X_PAD, "embedding-fold path requires vocab + 1 <= 128"

    # L2 column order: (gate i,f,g,o) x (dir fwd,bwd) x H.
    wih_l2 = (jnp.transpose(w_ih, (0, 2, 1)).reshape(2, d, 4, h)
              .transpose(1, 2, 0, 3).reshape(d, 8 * h))                # (D, 8H)
    bias_l2 = b.reshape(2, 4, h).transpose(1, 0, 2).reshape(1, 8 * h)  # (1, 8H)

    # Block-diagonal recurrent weight: rows = packed [h_fwd | h_bwd] features.
    whh_t = jnp.transpose(w_hh, (0, 2, 1)).reshape(2, h, 4, h)  # (dir,H,gate,H)
    whh_bd = jnp.zeros((2, h, 4, 2, h), jnp.float32)
    whh_bd = whh_bd.at[0, :, :, 0, :].set(whh_t[0])
    whh_bd = whh_bd.at[1, :, :, 1, :].set(whh_t[1])
    whh_bd = whh_bd.reshape(2 * h, 8 * h)                        # (2H, 8H)

    emb_part = jnp.dot(emb, wih_l2[:e, :])                       # (V, 8H)
    w = jnp.zeros((_X_PAD + 4 * h, 8 * h), jnp.float32)
    w = w.at[:v, :].set(emb_part)
    w = w.at[_X_PAD - 1, :].set(wih_l2[e, :])
    w = w.at[_X_PAD:_X_PAD + 2 * h, :].set(whh_bd)
    return {"w_fused": w.astype(jnp.bfloat16),
            "bias": bias_l2.astype(jnp.float32)}


def reference_forward(raw, input_ids, hidden, c, b_feature):
    """Pure-JAX reference of the PyTorch forward (eval mode, seq_len=1)."""
    hsz = raw["w_hh"].shape[-1]
    emb = raw["embedding"][input_ids.reshape(-1)]
    x = jnp.concatenate([emb, b_feature.reshape(-1, 1)], axis=-1)
    h_all, c_all = [], []
    for d in range(2):
        gates = (x @ raw["w_ih"][d].T + hidden[d] @ raw["w_hh"][d].T
                 + raw["b_ih"][d] + raw["b_hh"][d])
        i = jax.nn.sigmoid(gates[:, 0 * hsz:1 * hsz])
        f = jax.nn.sigmoid(gates[:, 1 * hsz:2 * hsz])
        g = jnp.tanh(gates[:, 2 * hsz:3 * hsz])
        o = jax.nn.sigmoid(gates[:, 3 * hsz:4 * hsz])
        cn = f * c[d] + i * g
        hn = o * jnp.tanh(cn)
        h_all.append(hn)
        c_all.append(cn)
    output = jnp.concatenate(h_all, axis=-1)[:, None, :]
    return output, (jnp.stack(h_all), jnp.stack(c_all))


if __name__ == "__main__":
    VOCAB = 50
    EMB_DIM = 31            # -> embedding_dim = 32
    HIDDEN = 32
    N = 8                   # flattened batch of tokens, seq_len = 1

    key = jax.random.PRNGKey(0)
    k_par, k_ids, k_h, k_c, k_b = jax.random.split(key, 5)

    raw = init_raw_params(k_par, VOCAB, EMB_DIM, HIDDEN)
    kparams = prepare_params(raw)

    input_ids = jax.random.randint(k_ids, (N, 1), 0, VOCAB, dtype=jnp.int32)
    hidden0 = jax.random.normal(k_h, (2, N, HIDDEN), jnp.float32)
    c0 = jax.random.normal(k_c, (2, N, HIDDEN), jnp.float32)
    b_feature = jax.random.normal(k_b, (N, 1, 1), jnp.float32)

    output, (hidden, c) = encoder_rnn_document_forward(
        kparams, input_ids, hidden0, c0, b_feature)
    jax.block_until_ready((output, hidden, c))

    assert output.shape == (N, 1, 2 * HIDDEN)
    assert hidden.shape == (2, N, HIDDEN)
    assert c.shape == (2, N, HIDDEN)

    ref_out, (ref_h, ref_c) = reference_forward(raw, input_ids, hidden0, c0,
                                                b_feature)
    np.testing.assert_allclose(np.asarray(output), np.asarray(ref_out),
                               atol=2e-2, rtol=2e-2)
    np.testing.assert_allclose(np.asarray(hidden), np.asarray(ref_h),
                               atol=2e-2, rtol=2e-2)
    np.testing.assert_allclose(np.asarray(c), np.asarray(ref_c),
                               atol=2e-2, rtol=2e-2)
    print("KERNEL_OK")
</pallas_src>

<mosaic_0001>
module attributes {stable_mosaic.version = 11 : i64} {
  func.func @_bilstm_fused_kernel(%arg0: i32, %arg1: memref<8x2xf32, #tpu.memory_space<vmem>>, %arg2: memref<8x128xf32, #tpu.memory_space<vmem>>, %arg3: memref<256x256xbf16, #tpu.memory_space<vmem>>, %arg4: memref<1x256xf32, #tpu.memory_space<vmem>>, %arg5: memref<8x128xf32, #tpu.memory_space<vmem>>) attributes {dimension_semantics = [#tpu.dimension_semantics<parallel>], iteration_bounds = array<i64: 1>, scalar_prefetch = 0 : i64, scratch_operands = 0 : i64, tpu.core_type = #tpu.core_type<tc>, window_params = [{transform_indices = @transform_0, window_bounds = array<i64: 8, 2>}, {transform_indices = @transform_1, window_bounds = array<i64: 8, 128>}, {pipeline_mode = #tpu.pipeline_mode<synchronous>, transform_indices = @transform_2, window_bounds = array<i64: 256, 256>}, {pipeline_mode = #tpu.pipeline_mode<synchronous>, transform_indices = @transform_3, window_bounds = array<i64: 1, 256>}, {transform_indices = @transform_4, window_bounds = array<i64: 8, 128>}]} {
    %c0 = arith.constant 0 : index
    %c0_0 = arith.constant 0 : index
    %0 = vector.load %arg1[%c0, %c0_0] : memref<8x2xf32, #tpu.memory_space<vmem>>, vector<8x2xf32>
    %1 = vector.extract_strided_slice %0 {offsets = [0, 0], sizes = [8, 1], strides = [1, 1]} : vector<8x2xf32> to vector<8x1xf32>
    %2 = arith.fptosi %1 : vector<8x1xf32> to vector<8x1xi32>
    %3 = vector.extract_strided_slice %0 {offsets = [0, 1], sizes = [8, 1], strides = [1, 1]} : vector<8x2xf32> to vector<8x1xf32>
    %4 = tpu.iota {dimensions = array<i32: 1>} : vector<8x128xi32>
    %5 = vector.broadcast %2 : vector<8x1xi32> to vector<8x128xi32>
    %6 = arith.cmpi eq, %4, %5 : vector<8x128xi32>
    %7 = arith.extui %6 : vector<8x128xi1> to vector<8x128xi32>
    %8 = arith.sitofp %7 : vector<8x128xi32> to vector<8x128xf32>
    %c127_i32 = arith.constant 127 : i32
    %9 = vector.broadcast %c127_i32 : i32 to vector<8x128xi32>
    %10 = arith.cmpi eq, %4, %9 : vector<8x128xi32>
    %11 = vector.shape_cast %3 : vector<8x1xf32> to vector<8x1xf32>
    %12 = vector.broadcast %11 : vector<8x1xf32> to vector<8x128xf32>
    %13 = arith.select %10, %12, %8 : vector<8x128xi1>, vector<8x128xf32>
    %c0_1 = arith.constant 0 : index
    %c0_2 = arith.constant 0 : index
    %14 = vector.load %arg2[%c0_1, %c0_2] : memref<8x128xf32, #tpu.memory_space<vmem>>, vector<8x128xf32>
    %15 = vector.extract_strided_slice %14 {offsets = [0, 64], sizes = [8, 64], strides = [1, 1]} : vector<8x128xf32> to vector<8x64xf32>
    %16 = tpu.concatenate %13, %14 in 1 : vector<8x128xf32>, vector<8x128xf32> -> vector<8x256xf32>
    %17 = arith.truncf %16 : vector<8x256xf32> to vector<8x256xbf16>
    %c0_3 = arith.constant 0 : index
    %c0_4 = arith.constant 0 : index
    %18 = vector.load %arg3[%c0_3, %c0_4] : memref<256x256xbf16, #tpu.memory_space<vmem>>, vector<256x256xbf16>
    %cst = arith.constant dense<0.000000e+00> : vector<8x256xf32>
    %19 = tpu.matmul %17, %18, %cst {dimension_numbers = #tpu.dot_dimension_numbers<[1], [0], [0], [1], [0, 0, 1, 1], [], []>} : vector<8x256xbf16>, vector<256x256xbf16>, vector<8x256xf32> -> vector<8x256xf32>
    %c0_5 = arith.constant 0 : index
    %c0_6 = arith.constant 0 : index
    %20 = vector.load %arg4[%c0_5, %c0_6] : memref<1x256xf32, #tpu.memory_space<vmem>>, vector<1x256xf32>
    %21 = vector.broadcast %20 : vector<1x256xf32> to vector<8x256xf32>
    %22 = arith.addf %19, %21 : vector<8x256xf32>
    %23 = tpu.iota {dimensions = array<i32: 1>} : vector<8x256xi32>
    %c128_i32 = arith.constant 128 : i32
    %24 = vector.broadcast %c128_i32 : i32 to vector<8x256xi32>
    %25 = arith.cmpi sge, %23, %24 : vector<8x256xi32>
    %c192_i32 = arith.constant 192 : i32
    %26 = vector.broadcast %c192_i32 : i32 to vector<8x256xi32>
    %27 = arith.cmpi slt, %23, %26 : vector<8x256xi32>
    %28 = arith.andi %25, %27 : vector<8x256xi1>
    %29 = math.tanh %22 : vector<8x256xf32>
    %30 = arith.negf %22 : vector<8x256xf32>
    %31 = math.exp %30 : vector<8x256xf32>
    %cst_7 = arith.constant 1.000000e+00 : f32
    %32 = vector.broadcast %cst_7 : f32 to vector<8x256xf32>
    %33 = arith.addf %32, %31 : vector<8x256xf32>
    %34 = arith.divf %32, %33 : vector<8x256xf32>
    %35 = arith.select %28, %29, %34 : vector<8x256xi1>, vector<8x256xf32>
    %36 = vector.extract_strided_slice %35 {offsets = [0, 0], sizes = [8, 64], strides = [1, 1]} : vector<8x256xf32> to vector<8x64xf32>
    %37 = vector.extract_strided_slice %35 {offsets = [0, 64], sizes = [8, 64], strides = [1, 1]} : vector<8x256xf32> to vector<8x64xf32>
    %38 = vector.extract_strided_slice %35 {offsets = [0, 128], sizes = [8, 64], strides = [1, 1]} : vector<8x256xf32> to vector<8x64xf32>
    %39 = vector.extract_strided_slice %35 {offsets = [0, 192], sizes = [8, 64], strides = [1, 1]} : vector<8x256xf32> to vector<8x64xf32>
    %40 = arith.mulf %37, %15 : vector<8x64xf32>
    %41 = arith.mulf %36, %38 : vector<8x64xf32>
    %42 = arith.addf %40, %41 : vector<8x64xf32>
    %43 = math.tanh %42 : vector<8x64xf32>
    %44 = arith.mulf %39, %43 : vector<8x64xf32>
    %45 = tpu.concatenate %44, %42 in 1 : vector<8x64xf32>, vector<8x64xf32> -> vector<8x128xf32>
    %c0_8 = arith.constant 0 : index
    %c0_9 = arith.constant 0 : index
    %46 = vector.load %arg5[%c0_8, %c0_9] : memref<8x128xf32, #tpu.memory_space<vmem>>, vector<8x128xf32>
    tpu.vector_store %arg5[%c0_8, %c0_9], %45 {strides = array<i32>} : memref<8x128xf32, #tpu.memory_space<vmem>>, vector<8x128xf32>,
    return
  }
  func.func @transform_0(%arg0: i32) -> (i32, i32) {
    %c0_i32 = arith.constant 0 : i32
    %c0_i32_0 = arith.constant 0 : i32
    return %arg0, %c0_i32 : i32, i32
  }
  func.func @transform_1(%arg0: i32) -> (i32, i32) {
    %c0_i32 = arith.constant 0 : i32
    %c0_i32_0 = arith.constant 0 : i32
    return %arg0, %c0_i32 : i32, i32
  }
  func.func @transform_2(%arg0: i32) -> (i32, i32) {
    %c0_i32 = arith.constant 0 : i32
    %c0_i32_0 = arith.constant 0 : i32
    %c0_i32_1 = arith.constant 0 : i32
    return %c0_i32, %c0_i32_0 : i32, i32
  }
  func.func @transform_3(%arg0: i32) -> (i32, i32) {
    %c0_i32 = arith.constant 0 : i32
    %c0_i32_0 = arith.constant 0 : i32
    %c0_i32_1 = arith.constant 0 : i32
    return %c0_i32, %c0_i32_0 : i32, i32
  }
  func.func @transform_4(%arg0: i32) -> (i32, i32) {
    %c0_i32 = arith.constant 0 : i32
    %c0_i32_0 = arith.constant 0 : i32
    return %arg0, %c0_i32 : i32, i32
  }
}

</mosaic_0001>

<bundles_post_ra>
// kernel: _encoder_core.1
= control target key start
LH: loop header
LB: loop body
LE: loop exit
PB: predicated region body
PF: predicated region fallthrough
CT: control target
= control target key end

     0   :  { %9 = vsyncpa [#allocation3], 0  ;;  %s468_s15 = smov [#allocation2]   ;;  %s520_s0 = inlined_call_operand.vmem [shape: f32[8,2], index: 0, kind: input, shape index: {}]   ;;  %s521_s1 = inlined_call_operand.vmem [shape: f32[8,128], index: 1, kind: input, shape index: {}, may-alias: {1,4}]   ;;  %s522_s2 = inlined_call_operand.hbm [shape: bf16[256,256], index: 2, kind: input, shape index: {}]   ;;  %s523_s3 = inlined_call_operand.vmem [shape: f32[1,256], index: 3, kind: input, shape index: {}]   ;;  %s524_s4 = inlined_call_operand.vmem [shape: f32[8,128], index: 4, kind: output, shape index: {}, may-alias: {1,4}]  }
   0x1   :  { %s19_s16 = sshll.u32 %s468_s15, 4  ;;  %s20_s16 = int_to_ptr.vmem [resolvable:$true] %s19_s16 }
   0x2   :  { %s454_s17 = scalar_lea.vmem %s20_s16, 4096  ;;  %p459_p1 = scmp.lt.s32.totalorder %s20_s16, %s20_s16 }
   0x3   :  { %p455_p0 = scmp.ne.s32.totalorder %s20_s16, %s454_s17  ;;  %p460_p2 = scmp.lt.s32.totalorder %s454_s17, %s454_s17 }
   0x5   :  { %p461_p3 = por %p460_p2, %p459_p1 }
   0x7   :  { %p462_p4 = pnand %p461_p3, %p455_p0 }
   0x9   :  { %465 = shalt.err (!%p462_p4)
}
   0xa   :  { %s469_s18 = smov 128   ;;  %s470_s19 = smov 8  }
   0xb   :  { %25 = dma.hbm_to_vmem [thread:$0]  %s522_s2, 4096, %s20_s16, [#allocation3], %s469_s18, %s469_s18, %s470_s19  }
   0xc   :  { %466 = dma.done.wait [#allocation3], 4096  }
   0xd   :  { %467 = vsyncadd [#allocation3], 4294963200  ;;  %v471_v0 = vmov 0   ;;  %v31_v1 = vld [vmem:[%s520_s0] sm:$0xff]  ;;  %v386_v3 = vld [vmem:[#allocation2 + $0x74] ss:$8 sps:$4 sm:$0xff]   ;;  %v33_v39 = vlaneseq }
   0xe   :  { %384 = vset.pattern.permute.xlu0 %v471_v0  ;;  %v375_v2 = vtrunc.f32 %v31_v1  ;;  %v388_v4 = vld [vmem:[#allocation2 + $0x70] ss:$8 sps:$4 sm:$0xff]   ;;  %v389_v5 = vld [vmem:[#allocation2 + $0x64] ss:$8 sps:$4 sm:$0xff]   ;;  %255 = vmatprep.subr.bf16.mxu0 %v386_v3  ;;  %v391_v7 = vld [vmem:[#allocation2 + $0x60] ss:$8 sps:$4 sm:$0xff]  }
   0xf   :  { %256 = vmatpush1.bf16.msra.mxu0 %v388_v4  ;;  %v392_v8 = vld [vmem:[#allocation2 + $0x54] ss:$8 sps:$4 sm:$0xff]   ;;  %v394_v9 = vld [vmem:[#allocation2 + $0x50] ss:$8 sps:$4 sm:$0xff]   ;;  %v472_v10 = vmov 1   ;;  %v509_v18 = vld [vmem:[%s521_s1] sm:$0xff] }
  0x10   :  { %v376_v6 = vcvt.f32.s32 %v375_v2  ;;  %257 = vmatprep.subr.bf16.mxu0 %v389_v5  ;;  %v395_v11 = vld [vmem:[#allocation2 + $0x44] ss:$8 sps:$4 sm:$0xff]   ;;  %v397_v12 = vld [vmem:[#allocation2 + $0x40] ss:$8 sps:$4 sm:$0xff]   ;;  %v398_v13 = vld [vmem:[#allocation2 + $0x34] ss:$8 sps:$4 sm:$0xff]   ;;  %v50_v19 = vpack.c.bf16 %v509_v18, %v509_v18 }
  0x11   :  { %v400_v14 = vld [vmem:[#allocation2 + $0x30] ss:$8 sps:$4 sm:$0xff]   ;;  %v401_v15 = vld [vmem:[#allocation2 + $0x24] ss:$8 sps:$4 sm:$0xff]   ;;  %v403_v16 = vld [vmem:[#allocation2 + $0x20] ss:$8 sps:$4 sm:$0xff]  }
  0x12   :  { %36 = vperm.xlu0 %384, %v376_v6   ;;  %v404_v17 = vld [vmem:[#allocation2 + $0x14] ss:$8 sps:$4 sm:$0xff]   ;;  %v406_v20 = vld [vmem:[#allocation2 + $0x10] ss:$8 sps:$4 sm:$0xff]   ;;  %287 = vmatprep.mubr.bf16.mxu0 %v50_v19  ;;  %v407_v21 = vld [vmem:[#allocation2 + $0x4] ss:$8 sps:$4 sm:$0xff]  }
  0x13   :  { %258 = vmatpush1.bf16.msra.mxu0 %v391_v7  ;;  %v409_v22 = vld [vmem:[#allocation2] ss:$8 sps:$4 sm:$0xff]   ;;  %v410_v23 = vld [vmem:[#allocation2 + $0xf4] ss:$8 sps:$4 sm:$0xff]   ;;  %v412_v24 = vld [vmem:[#allocation2 + $0xf0] ss:$8 sps:$4 sm:$0xff]  }
  0x14   :  { %259 = vmatprep.subr.bf16.mxu0 %v392_v8  ;;  %v413_v25 = vld [vmem:[#allocation2 + $0xe4] ss:$8 sps:$4 sm:$0xff]   ;;  %v415_v26 = vld [vmem:[#allocation2 + $0xe0] ss:$8 sps:$4 sm:$0xff]   ;;  %v416_v27 = vld [vmem:[#allocation2 + $0xd4] ss:$8 sps:$4 sm:$0xff]  }
  0x15   :  { %v418_v28 = vld [vmem:[#allocation2 + $0xd0] ss:$8 sps:$4 sm:$0xff]   ;;  %v419_v29 = vld [vmem:[#allocation2 + $0xc4] ss:$8 sps:$4 sm:$0xff]   ;;  %v421_v30 = vld [vmem:[#allocation2 + $0xc0] ss:$8 sps:$4 sm:$0xff]  }
  0x16   :  { %385 = vset.pattern.permute.xlu0 %v472_v10  ;;  %v422_v31 = vld [vmem:[#allocation2 + $0xb4] ss:$8 sps:$4 sm:$0xff]   ;;  %v424_v32 = vld [vmem:[#allocation2 + $0xb0] ss:$8 sps:$4 sm:$0xff]   ;;  %v425_v33 = vld [vmem:[#allocation2 + $0xa4] ss:$8 sps:$4 sm:$0xff]  }
  0x17   :  { %44 = vperm.xlu0 %385, %v31_v1   ;;  %260 = vmatpush1.bf16.msra.mxu0 %v394_v9  ;;  %v427_v34 = vld [vmem:[#allocation2 + $0xa0] ss:$8 sps:$4 sm:$0xff]   ;;  %v428_v35 = vld [vmem:[#allocation2 + $0x94] ss:$8 sps:$4 sm:$0xff]   ;;  %v430_v36 = vld [vmem:[#allocation2 + $0x90] ss:$8 sps:$4 sm:$0xff]  }
  0x18   :  { %261 = vmatprep.subr.bf16.mxu0 %v395_v11  ;;  %v431_v37 = vld [vmem:[#allocation2 + $0x84] ss:$8 sps:$4 sm:$0xff]   ;;  %v433_v38 = vld [vmem:[#allocation2 + $0x80] ss:$8 sps:$4 sm:$0xff]   ;;  %v34_v40 = vand.u32 127, %v33_v39  ;;  %v473_v42 = vmov 0.0  }
  0x19   :  { %v86_v47 = vshrl.u32 %v33_v39, 7  ;;  %v83_v49 = vld [vmem:[%s523_s3] sm:$0x3]  ;;  %s474_s3 = smov 64   ;;  %vm332_vm3 = vcmask 523264  }
  0x1a   :  { %vm41_vm1 = vcmp.eq.s32.totalorder %v34_v40, 127  ;;  %v296_v1 = vadd.s32 128, %v34_v40 }
  0x1b   :  { %262 = vmatpush1.bf16.msra.mxu0 %v397_v12  ;;  %v87_v48 = vsub.s32 0, %v86_v47  ;;  %v91_v50 = vsub.s32 1, %v86_v47 }
  0x1c   :  { %263 = vmatprep.subr.bf16.mxu0 %v398_v13  ;;  %vm300_vm2 = vcmp.lt.s32.totalorder %v296_v1, 192 }
  0x1d   :  { %v88_v51 = vrot.slane %v83_v49, %v87_v48  ;;  %v92_v52 = vrot.slane %v83_v49, %v91_v50 }
  0x1f   :  { %264 = vmatpush1.bf16.msra.mxu0 %v400_v14 }
  0x20   :  { %265 = vmatprep.subr.bf16.mxu0 %v401_v15 }
  0x23   :  { %266 = vmatpush1.bf16.msra.mxu0 %v403_v16 }
  0x24   :  { %267 = vmatprep.subr.bf16.mxu0 %v404_v17 }
  0x27   :  { %268 = vmatpush1.bf16.msra.mxu0 %v406_v20 }
  0x28   :  { %269 = vmatprep.subr.bf16.mxu0 %v407_v21 }
  0x2b   :  { %270 = vmatpush1.bf16.msra.mxu0 %v409_v22 }
  0x2c   :  { %271 = vmatprep.subr.bf16.mxu0 %v410_v23 }
  0x2f   :  { %272 = vmatpush2.bf16.msra.mxu0 %v412_v24 }
  0x30   :  { %273 = vmatprep.subr.bf16.mxu0 %v413_v25 }
  0x33   :  { %274 = vmatpush2.bf16.msra.mxu0 %v415_v26 }
  0x34   :  { %275 = vmatprep.subr.bf16.mxu0 %v416_v27 }
  0x37   :  { %276 = vmatpush2.bf16.msra.mxu0 %v418_v28 }
  0x38   :  { %277 = vmatprep.subr.bf16.mxu0 %v419_v29 }
  0x3b   :  { %278 = vmatpush2.bf16.msra.mxu0 %v421_v30 }
  0x3c   :  { %279 = vmatprep.subr.bf16.mxu0 %v422_v31 }
  0x3f   :  { %280 = vmatpush2.bf16.msra.mxu0 %v424_v32 }
  0x40   :  { %281 = vmatprep.subr.bf16.mxu0 %v425_v33 }
  0x43   :  { %282 = vmatpush2.bf16.msra.mxu0 %v427_v34 }
  0x44   :  { %283 = vmatprep.subr.bf16.mxu0 %v428_v35 }
  0x47   :  { %284 = vmatpush2.bf16.msra.mxu0 %v430_v36 }
  0x48   :  { %285 = vmatprep.subr.bf16.mxu0 %v431_v37 }
  0x4b   :  { %286 = vmatpush2.bf16.msra.mxu0 %v433_v38 }
  0x8d   :  { %v37_v41 = vpop.permute.xlu0 %36 }
  0x8e   :  { %vm38_vm0 = vcmp.eq.s32.totalorder %v34_v40, %v37_v41 }
  0x8f   :  { %v340_v43 = vsel %vm38_vm0, 1.0, %v473_v42 }
  0x92   :  { %v45_v44 = vpop.permute.xlu0 %44 }
  0x93   :  { %v47_v45 = vsel %vm41_vm1, %v45_v44, %v340_v43 }
  0x94   :  { %v49_v46 = vpack.c.bf16 %v47_v45, %v47_v45 }
  0x96   :  { %288 = vmatmul.mubr.bf16.vlgmr.msra.gmra.mxu0 %v49_v46 }
 0x156   :  { %v289_v53 = vpop.f32.mrf.mxu0 }
 0x157   :  { %v290_v54 = vadd.f32 %v289_v53, %v88_v51 }
 0x158   :  { %v291_v55 = vpop.f32.mrf.mxu0 }
 0x159   :  { %v373_v56 = vmul.f32 -1.442695, %v290_v54  ;;  %v292_v57 = vadd.f32 %v291_v55, %v92_v52 }
 0x15a   :  { %v293_v58 = vpop.f32.mrf.mxu0 }
 0x15b   :  { %434 = vpow2.f32 %v373_v56  ;;  %v374_v59 = vmul.f32 -1.442695, %v292_v57 }
 0x15c   :  { %v294_v60 = vpop.f32.mrf.mxu0 }
 0x15d   :  { %436 = vpow2.f32 %v374_v59 }
 0x15e   :  { %438 = vtanh.f32 %v292_v57 }
 0x168   :  { %v435_v61 = vpop.eup %434 }
 0x169   :  { %v311_v63 = vadd.f32 1.0, %v435_v61 }
 0x16a   :  { %v437_v62 = vpop.eup %436 }
 0x16b   :  { %v312_v0 = vadd.f32 1.0, %v437_v62  ;;  %v439_v2 = vpop.eup %438 }
 0x16d   :  { %440 = vrcp.f32 %v312_v0 }
 0x16e   :  { %442 = vrcp.f32 %v311_v63 }
 0x17a   :  { %v441_v3 = vpop.eup %440 }
 0x17b   :  { %v443_v4 = vpop.eup %442  ;;  %v318_v5 = vsel %vm300_vm2, %v439_v2, %v441_v3 }
 0x17c   :  { %v320_v6 = vmul.f32 %v443_v4, %v318_v5  ;;  %v319_v7 = vmul.f32 %v443_v4, %v509_v18 }
 0x17e   :  { %322 = vrot.lane.b32.xlu1 %v320_v6, %s474_s3 }
 0x1f0   :  { %v323_v8 = vpop.permute.xlu1 %322 }
 0x1f1   :  { %v325_v9 = vadd.f32 %v323_v8, %v319_v7 }
 0x1f3   :  { %444 = vtanh.f32 %v325_v9 }
 0x200   :  { %v445_v10 = vpop.eup %444 }
 0x201   :  { %v327_v11 = vmul.f32 %v445_v10, %v318_v5 }
 0x203   :  { %329 = vrot.lane.b32.xlu1 %v327_v11, %s474_s3 }
 0x275   :  { %v330_v12 = vpop.permute.xlu1 %329 }
 0x276   :  { %v333_v13 = vsel %vm332_vm3, %v330_v12, %v325_v9 }
 0x277   :  { %334 = vst [vmem:[%s524_s4] sm:$0xff] %v333_v13 }
 0x278   :  { %339 = vsyncpa [#allocation3], 1 }

</bundles_post_ra>
